<compile_context>
chip_gen: v5e
topology: v5e:2x2
jax: 0.10.0
libtpu: 0.0.40
codegen_flags: <defaults>
</compile_context>

<pallas_src>
import math
import functools

import jax
import jax.numpy as jnp
from jax.experimental import pallas as pl
from jax.experimental.pallas import tpu as pltpu


# ---------------------------------------------------------------------------
# Kernels
# ---------------------------------------------------------------------------
def _pe_add_kernel(x_ref, pe_ref, o_ref):
    # x_ref: [block_s, B, E], pe_ref: [block_s, 1, E]
    # pe broadcasts over the sublane (batch) axis -- essentially free.
    o_ref[...] = x_ref[...] + pe_ref[...]


def _pe_add_dropout_kernel(x_ref, pe_ref, bits_ref, o_ref, *, threshold, scale):
    # bits_ref: uint8 random bits, uniform in [0, 255].
    y = x_ref[...] + pe_ref[...]
    # Inverted dropout via integer threshold: P(keep) = (256 - threshold) / 256.
    keep = bits_ref[...].astype(jnp.int32) >= threshold
    o_ref[...] = jnp.where(keep, y * jnp.asarray(scale, y.dtype), jnp.zeros_like(y))


# ---------------------------------------------------------------------------
# Tiling helpers
# ---------------------------------------------------------------------------
def _vmem_capacity_bytes():
    try:
        return int(pltpu.get_tpu_info().vmem_capacity_bytes)
    except Exception:
        return 64 << 20  # conservative fallback: v7x per-TensorCore VMEM


def _pick_block_s(S, row_bytes_buffered, itemsize, budget_bytes):
    """Largest row tile whose double-buffered streams fit the VMEM budget."""
    # Row-axis alignment matched to the dtype's sublane packing.
    align = max(8, 32 // max(itemsize, 1))  # 8 for f32, 16 for bf16, 32 for int8/fp8
    max_rows = budget_bytes // max(row_bytes_buffered, 1)
    max_rows = max((max_rows // align) * align, align)
    block_s = min(S, max_rows)
    # Prefer >= 2 grid steps (lets "parallel" shard across v7x's 2 TensorCores).
    if block_s >= S and S > align:
        half = (S + 1) // 2
        half = ((half + align - 1) // align) * align
        block_s = min(block_s, half)
    return max(min(block_s, S), 1)


# ---------------------------------------------------------------------------
# Wrapper
# ---------------------------------------------------------------------------
def positional_encoding(x, pe, *, p_dropout, train=True, rng_key=None):
    """x: [S, B, E], pe: [max_n_sent, 1, E]. Returns [S, B, E]."""
    S, B, E = x.shape
    pe_s = pe[:S].astype(x.dtype)  # [S, 1, E] -- broadcast over B happens in-kernel
    itemsize = jnp.dtype(x.dtype).itemsize

    use_dropout = bool(train) and float(p_dropout) > 0.0
    if use_dropout and float(p_dropout) >= 1.0:
        return jnp.zeros_like(x)  # everything dropped; avoids inf scale
    if use_dropout and rng_key is None:
        raise ValueError("rng_key is required in training mode with p_dropout > 0")

    # Byte budget per S-row: x + out (+ uint8 bits) + pe, each double-buffered (x2).
    row_bytes = B * E * itemsize * 2 + E * itemsize
    if use_dropout:
        row_bytes += B * E  # uint8 bits
    vmem_cap = _vmem_capacity_bytes()
    budget = vmem_cap // 3  # leave headroom for Pallas internal scratch
    block_s = _pick_block_s(S, row_bytes * 2, itemsize, budget)
    grid = (pl.cdiv(S, block_s),)

    x_spec = pl.BlockSpec((block_s, B, E), lambda i: (i, 0, 0))
    pe_spec = pl.BlockSpec((block_s, 1, E), lambda i: (i, 0, 0))
    out_spec = pl.BlockSpec((block_s, B, E), lambda i: (i, 0, 0))
    cparams = pltpu.CompilerParams(
        dimension_semantics=("parallel",),
        vmem_limit_bytes=int(min((vmem_cap * 3) // 4, vmem_cap - (4 << 20))),
    )

    if use_dropout:
        bits = jax.random.bits(rng_key, (S, B, E), dtype=jnp.uint8)
        threshold = int(min(max(round(float(p_dropout) * 256.0), 0), 255))
        scale = 1.0 / (1.0 - float(p_dropout))
        kernel = functools.partial(
            _pe_add_dropout_kernel, threshold=threshold, scale=scale
        )
        bits_spec = pl.BlockSpec((block_s, B, E), lambda i: (i, 0, 0))
        return pl.pallas_call(
            kernel,
            out_shape=jax.ShapeDtypeStruct((S, B, E), x.dtype),
            grid=grid,
            in_specs=[x_spec, pe_spec, bits_spec],
            out_specs=out_spec,
            compiler_params=cparams,
        )(x, pe_s, bits)

    return pl.pallas_call(
        _pe_add_kernel,
        out_shape=jax.ShapeDtypeStruct((S, B, E), x.dtype),
        grid=grid,
        in_specs=[x_spec, pe_spec],
        out_specs=out_spec,
        compiler_params=cparams,
    )(x, pe_s)


def make_pe(emb_size, max_n_sent, dtype=jnp.float32):
    """Deterministic positional-encoding buffer, identical to the PyTorch __init__."""
    position = jnp.arange(max_n_sent, dtype=jnp.float32)[:, None]                  # [L, 1]
    div_term = jnp.exp(
        jnp.arange(0, emb_size, 2, dtype=jnp.float32) * (-math.log(10000.0) / emb_size)
    )                                                                              # [E/2]
    pe = jnp.zeros((max_n_sent, 1, emb_size), dtype=jnp.float32)
    pe = pe.at[:, 0, 0::2].set(jnp.sin(position * div_term))
    pe = pe.at[:, 0, 1::2].set(jnp.cos(position * div_term))
    return pe.astype(dtype)


if __name__ == "__main__":
    EMB_SIZE = 32         # emb_size
    MAX_PARA_LENGTH = 16  # max_n_sent
    TRANS_DROPOUT = 0.1   # dropout
    S, B = 8, 2           # sequence length, batch

    key = jax.random.PRNGKey(0)
    k_x, k_drop = jax.random.split(key)
    x = jax.random.normal(k_x, (S, B, EMB_SIZE), dtype=jnp.float32)
    pe = make_pe(EMB_SIZE, MAX_PARA_LENGTH)
    ref = x + pe[:S]

    # Eval mode (dropout is identity) -> deterministic, check against reference.
    out_eval = positional_encoding(x, pe, p_dropout=TRANS_DROPOUT, train=False)
    jax.block_until_ready(out_eval)
    assert jnp.allclose(out_eval, ref, atol=1e-6), "eval-mode mismatch vs reference"

    # Training mode (inverted dropout): rebuild the exact keep mask the wrapper
    # derives from the key and compare elementwise (no fragile != 0 test).
    out_train = positional_encoding(
        x, pe, p_dropout=TRANS_DROPOUT, train=True, rng_key=k_drop
    )
    jax.block_until_ready(out_train)
    bits = jax.random.bits(k_drop, (S, B, EMB_SIZE), dtype=jnp.uint8)
    threshold = int(min(max(round(TRANS_DROPOUT * 256.0), 0), 255))
    keep = bits.astype(jnp.int32) >= threshold
    scale = 1.0 / (1.0 - TRANS_DROPOUT)
    ref_train = jnp.where(keep, ref * jnp.float32(scale), jnp.zeros_like(ref))
    assert jnp.allclose(out_train, ref_train, atol=1e-6, rtol=1e-6), (
        "train-mode mismatch vs masked/scaled reference"
    )

    print("KERNEL_OK")
</pallas_src>

<mosaic_0001>
module attributes {stable_mosaic.version = 11 : i64} {
  func.func @_pe_add_kernel(%arg0: i32, %arg1: memref<8x2x32xf32, #tpu.memory_space<vmem>>, %arg2: memref<8x1x32xf32, #tpu.memory_space<vmem>>, %arg3: memref<8x2x32xf32, #tpu.memory_space<vmem>>) attributes {dimension_semantics = [#tpu.dimension_semantics<parallel>], iteration_bounds = array<i64: 1>, scalar_prefetch = 0 : i64, scratch_operands = 0 : i64, tpu.core_type = #tpu.core_type<tc>, window_params = [{transform_indices = @transform_0, window_bounds = array<i64: 8, 2, 32>}, {transform_indices = @transform_1, window_bounds = array<i64: 8, 1, 32>}, {transform_indices = @transform_2, window_bounds = array<i64: 8, 2, 32>}]} {
    %c0 = arith.constant 0 : index
    %c0_0 = arith.constant 0 : index
    %c0_1 = arith.constant 0 : index
    %0 = vector.load %arg1[%c0, %c0_0, %c0_1] : memref<8x2x32xf32, #tpu.memory_space<vmem>>, vector<8x2x32xf32>
    %c0_2 = arith.constant 0 : index
    %c0_3 = arith.constant 0 : index
    %c0_4 = arith.constant 0 : index
    %1 = vector.load %arg2[%c0_2, %c0_3, %c0_4] : memref<8x1x32xf32, #tpu.memory_space<vmem>>, vector<8x1x32xf32>
    %2 = vector.broadcast %1 : vector<8x1x32xf32> to vector<8x2x32xf32>
    %3 = arith.addf %0, %2 : vector<8x2x32xf32>
    %c0_5 = arith.constant 0 : index
    %c0_6 = arith.constant 0 : index
    %c0_7 = arith.constant 0 : index
    %4 = vector.load %arg3[%c0_5, %c0_6, %c0_7] : memref<8x2x32xf32, #tpu.memory_space<vmem>>, vector<8x2x32xf32>
    tpu.vector_store %arg3[%c0_5, %c0_6, %c0_7], %3 {strides = array<i32>} : memref<8x2x32xf32, #tpu.memory_space<vmem>>, vector<8x2x32xf32>,
    return
  }
  func.func @transform_0(%arg0: i32) -> (i32, i32, i32) {
    %c0_i32 = arith.constant 0 : i32
    %c0_i32_0 = arith.constant 0 : i32
    %c0_i32_1 = arith.constant 0 : i32
    return %arg0, %c0_i32, %c0_i32_0 : i32, i32, i32
  }
  func.func @transform_1(%arg0: i32) -> (i32, i32, i32) {
    %c0_i32 = arith.constant 0 : i32
    %c0_i32_0 = arith.constant 0 : i32
    %c0_i32_1 = arith.constant 0 : i32
    return %arg0, %c0_i32, %c0_i32_0 : i32, i32, i32
  }
  func.func @transform_2(%arg0: i32) -> (i32, i32, i32) {
    %c0_i32 = arith.constant 0 : i32
    %c0_i32_0 = arith.constant 0 : i32
    %c0_i32_1 = arith.constant 0 : i32
    return %arg0, %c0_i32, %c0_i32_0 : i32, i32, i32
  }
}

</mosaic_0001>

<bundles_post_ra>
// kernel: tpu_custom_call.1
= control target key start
LH: loop header
LB: loop body
LE: loop exit
PB: predicated region body
PF: predicated region fallthrough
CT: control target
= control target key end

     0   :  { %7 = vsyncpa [#allocation3], 0  ;;  %s266_s0 = inlined_call_operand.hbm [shape: f32[8,2,32], index: 0, kind: input, shape index: {}]   ;;  %s267_s1 = inlined_call_operand.hbm [shape: f32[8,1,32], index: 1, kind: input, shape index: {}]   ;;  %s268_s2 = inlined_call_operand.hbm [shape: f32[8,2,32], index: 2, kind: output, shape index: {}]  }
   0x1   :  { %8 = vsyncpa [#allocation6], 0 }
   0x2   :  { %9 = vsyncpa [#allocation4], 0  ;;  %s14_s11 = sshll.u32 %s266_s0, 4  ;;  %s214_s12 = smov [#allocation2]   ;;  %s15_s11 = int_to_ptr.hbm [resolvable:$true] %s14_s11 }
   0x3   :  { %s16_s13 = sshll.u32 %s214_s12, 4  ;;  %s27_s16 = sshll.u32 %s267_s1, 4  ;;  %s17_s13 = int_to_ptr.vmem [resolvable:$true] %s16_s13  ;;  %s28_s16 = int_to_ptr.hbm [resolvable:$true] %s27_s16 }
   0x4   :  { %s215_s17 = smov 32   ;;  %s216_s18 = smov 2  }
   0x5   :  { %22 = dma.hbm_to_vmem [thread:$0]  %s15_s11, 256, %s17_s13, [#allocation3], %s215_s17, %s215_s17, %s216_s18  }
   0x6   :  { %s217_s19 = smov [#allocation5]   ;;  %s218_s21 = smov 16  }
   0x7   :  { %s29_s20 = sshll.u32 %s217_s19, 4  ;;  %s219_s0 = smov 1   ;;  %s30_s20 = int_to_ptr.vmem [resolvable:$true] %s29_s20 }
   0x8   :  { %35 = dma.hbm_to_vmem [thread:$0]  %s28_s16, 128, %s30_s20, [#allocation6], %s218_s21, %s218_s21, %s219_s0  }
   0x9   :  { %208 = dma.done.wait [#allocation3], 256  }
   0xa   :  { %209 = vsyncadd [#allocation3], 4294967040 }
   0xb   :  { %210 = dma.done.wait [#allocation6], 128  }
   0xc   :  { %211 = vsyncadd [#allocation6], 4294967168  ;;  %vm92_vm0 = vcmask 254976   ;;  %s220_s22 = smov [#allocation7]   ;;  %s107_s25 = sshll.u32 %s268_s2, 4  ;;  %s108_s25 = int_to_ptr.hbm [resolvable:$true] %s107_s25 }
   0xd   :  { %s245_s1 = sshll.u32 %s220_s22, 4  ;;  %v44_v0 = vld [vmem:[#allocation2] sm:$0x3]  ;;  %v128_v1 = vld [vmem:[#allocation5] ss:$0 sm:$0xff]  ;;  %s106_s1 = int_to_ptr.vmem [resolvable:$true] %s245_s1 }
   0xe   :  { %v45_v2 = vld [vmem:[#allocation2 + $0x2] sm:$0x3]  ;;  %v129_v3 = vld [vmem:[#allocation5 + $0x1] ss:$0 sm:$0xff]  ;;  %v84_v4 = vadd.f32 %v128_v1, %v44_v0  ;;  %v46_v5 = vld [vmem:[#allocation2 + $0x4] sm:$0x3] }
   0xf   :  { %v130_v6 = vld [vmem:[#allocation5 + $0x2] ss:$0 sm:$0xff]  ;;  %v85_v7 = vadd.f32 %v129_v3, %v45_v2  ;;  %v47_v8 = vld [vmem:[#allocation2 + $0x6] sm:$0x3]  ;;  %v131_v9 = vld [vmem:[#allocation5 + $0x3] ss:$0 sm:$0xff] }
  0x10   :  { %93 = vst.msk [vmem:[#allocation7] sm:$0x3] %vm92_vm0, %v84_v4  ;;  %v86_v10 = vadd.f32 %v130_v6, %v46_v5  ;;  %v48_v11 = vld [vmem:[#allocation2 + $0x8] sm:$0x3]  ;;  %v87_v12 = vadd.f32 %v131_v9, %v47_v8  ;;  %v132_v13 = vld [vmem:[#allocation5 + $0x4] ss:$0 sm:$0xff] }
  0x11   :  { %94 = vst.msk [vmem:[#allocation7 + $0x2] sm:$0x3] %vm92_vm0, %v85_v7  ;;  %v49_v14 = vld [vmem:[#allocation2 + $0xa] sm:$0x3]  ;;  %v133_v15 = vld [vmem:[#allocation5 + $0x5] ss:$0 sm:$0xff]  ;;  %v88_v16 = vadd.f32 %v132_v13, %v48_v11 }
  0x12   :  { %95 = vst.msk [vmem:[#allocation7 + $0x4] sm:$0x3] %vm92_vm0, %v86_v10  ;;  %v50_v17 = vld [vmem:[#allocation2 + $0xc] sm:$0x3]  ;;  %v89_v18 = vadd.f32 %v133_v15, %v49_v14  ;;  %v134_v19 = vld [vmem:[#allocation5 + $0x6] ss:$0 sm:$0xff] }
  0x13   :  { %96 = vst.msk [vmem:[#allocation7 + $0x6] sm:$0x3] %vm92_vm0, %v87_v12  ;;  %v51_v20 = vld [vmem:[#allocation2 + $0xe] sm:$0x3]  ;;  %v135_v21 = vld [vmem:[#allocation5 + $0x7] ss:$0 sm:$0xff]  ;;  %v90_v22 = vadd.f32 %v134_v19, %v50_v17 }
  0x14   :  { %97 = vst.msk [vmem:[#allocation7 + $0x8] sm:$0x3] %vm92_vm0, %v88_v16  ;;  %v91_v23 = vadd.f32 %v135_v21, %v51_v20 }
  0x15   :  { %98 = vst.msk [vmem:[#allocation7 + $0xa] sm:$0x3] %vm92_vm0, %v89_v18 }
  0x16   :  { %99 = vst.msk [vmem:[#allocation7 + $0xc] sm:$0x3] %vm92_vm0, %v90_v22 }
  0x17   :  { %100 = vst.msk [vmem:[#allocation7 + $0xe] sm:$0x3] %vm92_vm0, %v91_v23 }
  0x18   :  { %113 = dma.vmem_to_hbm [thread:$0]  %s106_s1, 256, %s108_s25, [#allocation4], %s215_s17, %s215_s17, %s216_s18  }
  0x19   :  { %212 = dma.done.wait [#allocation4], 256  }
  0x1a   :  { %213 = vsyncadd [#allocation4], 4294967040 }
  0x1b   :  { %118 = vsyncpa [#allocation3], 1 }
  0x1c   :  { %119 = vsyncpa [#allocation6], 1 }
  0x1d   :  { %120 = vsyncpa [#allocation4], 1 }

</bundles_post_ra>
